<compile_context>
chip_gen: v7x
topology: tpu7x:2x2x1
jax: 0.10.0
libtpu: 0.0.40
codegen_flags: <defaults>
</compile_context>

<pallas_src>
import math
import functools

import jax
import jax.numpy as jnp
from jax.experimental import pallas as pl
from jax.experimental.pallas import tpu as pltpu


def _encoder_layer_kernel(
    x_in_ref,
    w_in_ref, b_in_ref, w_ao_ref, b_ao_ref,
    ln1w_ref, ln1b_ref, ln2w_ref, ln2b_ref,
    w_f1_ref, b_f1_ref, w_f2_ref, b_f2_ref,
    w_o_ref, b_o_ref,
    z_ref,
    x_ref,                      # persistent VMEM scratch carrying activations
    *, heads, d_model, eps, cls_pos):
    L = pl.program_id(0)

    @pl.when(L == 0)
    def _():
        x_ref[...] = x_in_ref[...]

    x = x_ref[...]                                  # (n, d) f32
    n = x.shape[0]
    head_dim = d_model // heads
    mx_dt = w_in_ref.dtype                          # f32 or bf16 MXU inputs

    def layer_norm(v, w, b):
        mu = jnp.mean(v, axis=-1, keepdims=True)
        var = jnp.mean((v - mu) ** 2, axis=-1, keepdims=True)
        return (v - mu) * jax.lax.rsqrt(var + eps) * w + b

    # ---- multi-head self-attention (heads batched in one einsum pair) ----
    # 1/sqrt(head_dim) is already folded into the q columns of w_in / b_in.
    qkv = jnp.dot(x.astype(mx_dt), w_in_ref[...],
                  preferred_element_type=jnp.float32) + b_in_ref[...]   # (n, 3d)
    q = qkv[:, 0:d_model].reshape(n, heads, head_dim)
    k = qkv[:, d_model:2 * d_model].reshape(n, heads, head_dim)
    v = qkv[:, 2 * d_model:3 * d_model].reshape(n, heads, head_dim)

    s = jnp.einsum('qhd,khd->hqk', q, k,
                   preferred_element_type=jnp.float32)                  # (h, n, n)
    s = s - jnp.max(s, axis=-1, keepdims=True)
    p = jnp.exp(s)
    p = p * pl.reciprocal(jnp.sum(p, axis=-1, keepdims=True), approx=True)
    ctx = jnp.einsum('hqk,khd->qhd', p, v,
                     preferred_element_type=jnp.float32)                # (n, h, hd)
    attn = ctx.reshape(n, d_model)
    attn = jnp.dot(attn.astype(mx_dt), w_ao_ref[...],
                   preferred_element_type=jnp.float32) + b_ao_ref[...]

    x = layer_norm(x + attn, ln1w_ref[...], ln1b_ref[...])

    # ---- position-wise feed-forward (ReLU) ----
    h1 = jnp.dot(x.astype(mx_dt), w_f1_ref[...],
                 preferred_element_type=jnp.float32) + b_f1_ref[...]
    h1 = jnp.maximum(h1, 0.0)
    h2 = jnp.dot(h1.astype(mx_dt), w_f2_ref[...],
                 preferred_element_type=jnp.float32) + b_f2_ref[...]

    x = layer_norm(x + h2, ln2w_ref[...], ln2b_ref[...])
    x_ref[...] = x                                   # carry to next layer

    # ---- output linear on the classification position (last layer only) ----
    @pl.when(L == pl.num_programs(0) - 1)
    def _():
        y_cls = x[cls_pos:cls_pos + 1, :]            # (1, d)
        z_ref[...] = (jnp.dot(y_cls.astype(w_o_ref.dtype), w_o_ref[...],
                              preferred_element_type=jnp.float32)
                      + b_o_ref[...])                # (1, 1)


def standard_positional_encoding(n, d_model):
    """Sinusoidal PE from Vaswani et al. 2017, shape (n, d_model). Assumes even d_model."""
    pos = jnp.arange(n, dtype=jnp.float32)[:, None]
    div = jnp.exp(jnp.arange(0, d_model, 2, dtype=jnp.float32)
                  * (-math.log(10000.0) / d_model))
    pe = jnp.zeros((n, d_model), dtype=jnp.float32)
    pe = pe.at[:, 0::2].set(jnp.sin(pos * div))
    pe = pe.at[:, 1::2].set(jnp.cos(pos * div))
    return pe


def init_params(key, alphabet_size, layers, heads, d_model, d_ffnn):
    """Parameters in PyTorch nn.TransformerEncoderLayer layout."""
    ks = jax.random.split(key, 8)
    s = 0.02
    return {
        "embedding": jax.random.normal(ks[0], (alphabet_size, d_model), jnp.float32) * s,
        "in_proj_w": jax.random.normal(ks[1], (layers, 3 * d_model, d_model), jnp.float32) * s,
        "in_proj_b": jnp.zeros((layers, 1, 3 * d_model), jnp.float32),
        "out_proj_w": jax.random.normal(ks[2], (layers, d_model, d_model), jnp.float32) * s,
        "out_proj_b": jnp.zeros((layers, 1, d_model), jnp.float32),
        "ln1_w": jnp.ones((layers, 1, d_model), jnp.float32),
        "ln1_b": jnp.zeros((layers, 1, d_model), jnp.float32),
        "ln2_w": jnp.ones((layers, 1, d_model), jnp.float32),
        "ln2_b": jnp.zeros((layers, 1, d_model), jnp.float32),
        "ffn1_w": jax.random.normal(ks[3], (layers, d_ffnn, d_model), jnp.float32) * s,
        "ffn1_b": jnp.zeros((layers, 1, d_ffnn), jnp.float32),
        "ffn2_w": jax.random.normal(ks[4], (layers, d_model, d_ffnn), jnp.float32) * s,
        "ffn2_b": jnp.zeros((layers, 1, d_model), jnp.float32),
        "out_w": jax.random.normal(ks[5], (1, d_model), jnp.float32) * s,
        "out_b": jnp.zeros((1, 1), jnp.float32),
    }


def pack_params(params, *, heads, mxu_dtype=jnp.float32):
    """One-time host-side layout change:
      - pre-transpose every matmul weight so the kernel never does `.T`
      - fold 1/sqrt(head_dim) into the q columns of the qkv projection (exact)
      - optionally cast MXU inputs to bf16 (recommended on v6e/v7x); biases
        and layer-norm params stay f32 (stats computed in f32 in-kernel).
    """
    d_model = params["out_proj_w"].shape[-1]
    head_dim = d_model // heads
    scale = 1.0 / math.sqrt(head_dim)
    col_scale = jnp.concatenate([
        jnp.full((d_model,), scale, jnp.float32),
        jnp.ones((2 * d_model,), jnp.float32)])          # scale only the q outputs

    w_in = jnp.swapaxes(params["in_proj_w"], 1, 2) * col_scale[None, None, :]
    b_in = params["in_proj_b"] * col_scale[None, None, :]
    return {
        "embedding": params["embedding"],
        "w_in": w_in.astype(mxu_dtype),                                  # (L, d, 3d)
        "b_in": b_in,                                                    # (L, 1, 3d)
        "w_ao": jnp.swapaxes(params["out_proj_w"], 1, 2).astype(mxu_dtype),  # (L, d, d)
        "b_ao": params["out_proj_b"],
        "ln1_w": params["ln1_w"], "ln1_b": params["ln1_b"],
        "ln2_w": params["ln2_w"], "ln2_b": params["ln2_b"],
        "w_f1": jnp.swapaxes(params["ffn1_w"], 1, 2).astype(mxu_dtype),  # (L, d, dff)
        "b_f1": params["ffn1_b"],
        "w_f2": jnp.swapaxes(params["ffn2_w"], 1, 2).astype(mxu_dtype),  # (L, dff, d)
        "b_f2": params["ffn2_b"],
        "w_o": params["out_w"].T.astype(mxu_dtype),                      # (d, 1)
        "b_o": params["out_b"],                                          # (1, 1)
    }


def _size_bytes(a):
    n = 1
    for s in a.shape:
        n *= int(s)
    return n * a.dtype.itemsize


def standard_transformer_forward(w_tokens, packed, *, layers, heads, d_model,
                                 d_ffnn, eps=1e-5, cls_pos=0):
    n = int(w_tokens.shape[0])
    # Glue (plain JAX): embedding gather + positional encoding.
    x = (packed["embedding"][w_tokens]
         + standard_positional_encoding(n, d_model)).astype(jnp.float32)

    kernel = functools.partial(
        _encoder_layer_kernel,
        heads=heads, d_model=d_model, eps=eps, cls_pos=cls_pos)

    def per_layer(*trail):
        # Leading layer axis squeezed; streamed (double-buffered) per grid step.
        return pl.BlockSpec((None,) + trail, lambda L: (L,) + (0,) * len(trail))

    def whole(*shape):
        return pl.BlockSpec(shape, lambda L: (0,) * len(shape))

    in_specs = [
        whole(n, d_model),                                   # x
        per_layer(d_model, 3 * d_model), per_layer(1, 3 * d_model),   # qkv proj
        per_layer(d_model, d_model),     per_layer(1, d_model),       # attn out proj
        per_layer(1, d_model), per_layer(1, d_model),                 # ln1
        per_layer(1, d_model), per_layer(1, d_model),                 # ln2
        per_layer(d_model, d_ffnn), per_layer(1, d_ffnn),             # ffn1
        per_layer(d_ffnn, d_model), per_layer(1, d_model),            # ffn2
        whole(d_model, 1), whole(1, 1),                               # output linear
    ]
    out_specs = whole(1, 1)

    args = (x,
            packed["w_in"], packed["b_in"], packed["w_ao"], packed["b_ao"],
            packed["ln1_w"], packed["ln1_b"], packed["ln2_w"], packed["ln2_b"],
            packed["w_f1"], packed["b_f1"], packed["w_f2"], packed["b_f2"],
            packed["w_o"], packed["b_o"])

    # VMEM budget: 2x (double-buffered) one layer of weights + resident bits + headroom.
    per_layer_keys = ("w_in", "b_in", "w_ao", "b_ao", "ln1_w", "ln1_b",
                      "ln2_w", "ln2_b", "w_f1", "b_f1", "w_f2", "b_f2")
    layer_bytes = sum(_size_bytes(packed[k]) for k in per_layer_keys) // layers
    resident_bytes = (2 * n * d_model * 4
                      + _size_bytes(packed["w_o"]) + _size_bytes(packed["b_o"]) + 4)
    vmem_limit = min(64 * 1024 * 1024,
                     2 * layer_bytes + resident_bytes + (8 << 20))

    flops = 2 * layers * n * (3 * d_model * d_model        # qkv projection
                              + 2 * n * d_model            # scores + P·V
                              + d_model * d_model          # attention out proj
                              + 2 * d_model * d_ffnn)      # feed-forward
    flops += 2 * d_model                                   # final linear
    transcendentals = layers * (heads * n * n + 2 * n)     # softmax exp + LN rsqrt
    bytes_accessed = sum(_size_bytes(a) for a in args) + 4

    z = pl.pallas_call(
        kernel,
        out_shape=jax.ShapeDtypeStruct((1, 1), jnp.float32),
        grid=(layers,),
        in_specs=in_specs,
        out_specs=out_specs,
        scratch_shapes=[pltpu.VMEM((n, d_model), jnp.float32)],
        compiler_params=pltpu.CompilerParams(
            dimension_semantics=("arbitrary",),            # sequential layer carry
            vmem_limit_bytes=int(vmem_limit)),
        cost_estimate=pl.CostEstimate(
            flops=int(flops),
            transcendentals=int(transcendentals),
            bytes_accessed=int(bytes_accessed)),
    )(*args)
    return z.reshape(1)          # matches Linear(d_model, 1)(y[cls_pos]) -> shape (1,)


if __name__ == "__main__":
    alphabet_size = 5
    layers = 2
    heads = 2
    d_model = 32
    d_ffnn = 64
    seq_len = 8
    cls_pos = 0

    key = jax.random.PRNGKey(0)
    k_par, k_tok = jax.random.split(key)
    params = init_params(k_par, alphabet_size, layers, heads, d_model, d_ffnn)
    # One-time host-side repack (pre-transpose + fold qk scale).
    # On v6e/v7x, pass mxu_dtype=jnp.bfloat16 for ~2x MXU rate and half the weight DMA.
    packed = pack_params(params, heads=heads, mxu_dtype=jnp.float32)
    w = jax.random.randint(k_tok, (seq_len,), 0, alphabet_size, dtype=jnp.int32)

    fwd = jax.jit(functools.partial(
        standard_transformer_forward, layers=layers, heads=heads,
        d_model=d_model, d_ffnn=d_ffnn, eps=1e-5, cls_pos=cls_pos))

    # TODO(synk): for throughput, batch many sequences per call (stack along the
    # sublane axis / add a 'parallel' grid dim) — single seq=8, d=32 leaves the
    # vregs/MXU mostly idle by construction.
    z = fwd(w, packed)
    jax.block_until_ready(z)
    assert z.shape == (1,)
    print("KERNEL_OK")
</pallas_src>

<mosaic_0001>
module attributes {stable_mosaic.version = 11 : i64} {
  func.func @_encoder_layer_kernel(%arg0: i32, %arg1: memref<8x32xf32, #tpu.memory_space<vmem>>, %arg2: memref<1x32x96xf32, #tpu.memory_space<vmem>>, %arg3: memref<1x1x96xf32, #tpu.memory_space<vmem>>, %arg4: memref<1x32x32xf32, #tpu.memory_space<vmem>>, %arg5: memref<1x1x32xf32, #tpu.memory_space<vmem>>, %arg6: memref<1x1x32xf32, #tpu.memory_space<vmem>>, %arg7: memref<1x1x32xf32, #tpu.memory_space<vmem>>, %arg8: memref<1x1x32xf32, #tpu.memory_space<vmem>>, %arg9: memref<1x1x32xf32, #tpu.memory_space<vmem>>, %arg10: memref<1x32x64xf32, #tpu.memory_space<vmem>>, %arg11: memref<1x1x64xf32, #tpu.memory_space<vmem>>, %arg12: memref<1x64x32xf32, #tpu.memory_space<vmem>>, %arg13: memref<1x1x32xf32, #tpu.memory_space<vmem>>, %arg14: memref<32x1xf32, #tpu.memory_space<vmem>>, %arg15: memref<1x1xf32, #tpu.memory_space<vmem>>, %arg16: memref<1x1xf32, #tpu.memory_space<vmem>>, %arg17: memref<8x32xf32, #tpu.memory_space<vmem>>) attributes {dimension_semantics = [#tpu.dimension_semantics<arbitrary>], iteration_bounds = array<i64: 2>, scalar_prefetch = 0 : i64, scratch_operands = 1 : i64, tpu.core_type = #tpu.core_type<tc>, window_params = [{pipeline_mode = #tpu.pipeline_mode<synchronous>, transform_indices = @transform_0, window_bounds = array<i64: 8, 32>}, {transform_indices = @transform_1, window_bounds = array<i64: 1, 32, 96>}, {transform_indices = @transform_2, window_bounds = array<i64: 1, 1, 96>}, {transform_indices = @transform_3, window_bounds = array<i64: 1, 32, 32>}, {transform_indices = @transform_4, window_bounds = array<i64: 1, 1, 32>}, {transform_indices = @transform_5, window_bounds = array<i64: 1, 1, 32>}, {transform_indices = @transform_6, window_bounds = array<i64: 1, 1, 32>}, {transform_indices = @transform_7, window_bounds = array<i64: 1, 1, 32>}, {transform_indices = @transform_8, window_bounds = array<i64: 1, 1, 32>}, {transform_indices = @transform_9, window_bounds = array<i64: 1, 32, 64>}, {transform_indices = @transform_10, window_bounds = array<i64: 1, 1, 64>}, {transform_indices = @transform_11, window_bounds = array<i64: 1, 64, 32>}, {transform_indices = @transform_12, window_bounds = array<i64: 1, 1, 32>}, {pipeline_mode = #tpu.pipeline_mode<synchronous>, transform_indices = @transform_13, window_bounds = array<i64: 32, 1>}, {pipeline_mode = #tpu.pipeline_mode<synchronous>, transform_indices = @transform_14, window_bounds = array<i64: 1, 1>}, {pipeline_mode = #tpu.pipeline_mode<synchronous>, transform_indices = @transform_15, window_bounds = array<i64: 1, 1>}]} {
    %c0_i32 = arith.constant 0 : i32
    %0 = arith.cmpi eq, %arg0, %c0_i32 : i32
    %1 = arith.extui %0 : i1 to i32
    %c0_i32_0 = arith.constant 0 : i32
    %2 = arith.cmpi ne, %1, %c0_i32_0 : i32
    scf.if %2 {
      %c0_59 = arith.constant 0 : index
      %c0_60 = arith.constant 0 : index
      %112 = vector.load %arg1[%c0_59, %c0_60] : memref<8x32xf32, #tpu.memory_space<vmem>>, vector<8x32xf32>
      %c0_61 = arith.constant 0 : index
      %c0_62 = arith.constant 0 : index
      %113 = vector.load %arg17[%c0_61, %c0_62] : memref<8x32xf32, #tpu.memory_space<vmem>>, vector<8x32xf32>
      tpu.vector_store %arg17[%c0_61, %c0_62], %112 {strides = array<i32>} : memref<8x32xf32, #tpu.memory_space<vmem>>, vector<8x32xf32>,
    } else {
    }
    %c0 = arith.constant 0 : index
    %c0_1 = arith.constant 0 : index
    %3 = vector.load %arg17[%c0, %c0_1] : memref<8x32xf32, #tpu.memory_space<vmem>>, vector<8x32xf32>
    %c0_2 = arith.constant 0 : index
    %c0_3 = arith.constant 0 : index
    %c0_4 = arith.constant 0 : index
    %4 = vector.load %arg2[%c0_2, %c0_3, %c0_4] : memref<1x32x96xf32, #tpu.memory_space<vmem>>, vector<1x32x96xf32>
    %5 = vector.shape_cast %4 : vector<1x32x96xf32> to vector<32x96xf32>
    %cst = arith.constant dense<0.000000e+00> : vector<8x96xf32>
    %6 = tpu.matmul %3, %5, %cst {dimension_numbers = #tpu.dot_dimension_numbers<[1], [0], [0], [1], [0, 0, 1, 1], [], []>} : vector<8x32xf32>, vector<32x96xf32>, vector<8x96xf32> -> vector<8x96xf32>
    %c0_5 = arith.constant 0 : index
    %c0_6 = arith.constant 0 : index
    %c0_7 = arith.constant 0 : index
    %7 = vector.load %arg3[%c0_5, %c0_6, %c0_7] : memref<1x1x96xf32, #tpu.memory_space<vmem>>, vector<1x1x96xf32>
    %8 = vector.shape_cast %7 : vector<1x1x96xf32> to vector<1x96xf32>
    %9 = vector.broadcast %8 : vector<1x96xf32> to vector<8x96xf32>
    %10 = arith.addf %6, %9 : vector<8x96xf32>
    %11 = vector.extract_strided_slice %10 {offsets = [0, 0], sizes = [8, 32], strides = [1, 1]} : vector<8x96xf32> to vector<8x32xf32>
    %12 = vector.shape_cast %11 : vector<8x32xf32> to vector<8x2x16xf32>
    %13 = vector.extract_strided_slice %10 {offsets = [0, 32], sizes = [8, 32], strides = [1, 1]} : vector<8x96xf32> to vector<8x32xf32>
    %14 = vector.shape_cast %13 : vector<8x32xf32> to vector<8x2x16xf32>
    %15 = vector.extract_strided_slice %10 {offsets = [0, 64], sizes = [8, 32], strides = [1, 1]} : vector<8x96xf32> to vector<8x32xf32>
    %16 = vector.shape_cast %15 : vector<8x32xf32> to vector<8x2x16xf32>
    "tpu.trace_start"() <{level = 10 : i32, message = "qhd,khd->hqk"}> : () -> ()
    %cst_8 = arith.constant dense<0.000000e+00> : vector<2x8x8xf32>
    %17 = tpu.matmul %12, %14, %cst_8 {dimension_numbers = #tpu.dot_dimension_numbers<[2], [2], [0], [0], [0, 1, 0, 0, 1, 0], [1], [1]>} : vector<8x2x16xf32>, vector<8x2x16xf32>, vector<2x8x8xf32> -> vector<2x8x8xf32>
    "tpu.trace_stop"() : () -> ()
    %cst_9 = arith.constant dense<0xFF800000> : vector<2x8xf32>
    %18 = vector.multi_reduction <maximumf>, %17, %cst_9 [2] : vector<2x8x8xf32> to vector<2x8xf32>
    %19 = vector.shape_cast %18 : vector<2x8xf32> to vector<2x8x1xf32>
    %20 = vector.broadcast %19 : vector<2x8x1xf32> to vector<2x8x8xf32>
    %21 = arith.subf %17, %20 : vector<2x8x8xf32>
    %22 = math.exp %21 : vector<2x8x8xf32>
    %cst_10 = arith.constant dense<0.000000e+00> : vector<2x8xf32>
    %23 = vector.multi_reduction <add>, %22, %cst_10 [2] : vector<2x8x8xf32> to vector<2x8xf32>
    %24 = vector.shape_cast %23 : vector<2x8xf32> to vector<2x8x1xf32>
    %25 = tpu.reciprocal %24 {approx = true} : vector<2x8x1xf32> -> vector<2x8x1xf32>
    %26 = vector.broadcast %25 : vector<2x8x1xf32> to vector<2x8x8xf32>
    %27 = arith.mulf %22, %26 : vector<2x8x8xf32>
    "tpu.trace_start"() <{level = 10 : i32, message = "hqk,khd->qhd"}> : () -> ()
    %cst_11 = arith.constant dense<0.000000e+00> : vector<2x16x8xf32>
    %28 = tpu.matmul %16, %27, %cst_11 {dimension_numbers = #tpu.dot_dimension_numbers<[0], [2], [2], [1], [0, 1, 0, 2, 1, 1], [1], [0]>} : vector<8x2x16xf32>, vector<2x8x8xf32>, vector<2x16x8xf32> -> vector<2x16x8xf32>
    %29 = tpu.transpose %28, [2, 0, 1] : vector<2x16x8xf32> -> vector<8x2x16xf32>
    "tpu.trace_stop"() : () -> ()
    %30 = vector.shape_cast %29 : vector<8x2x16xf32> to vector<8x32xf32>
    %c0_12 = arith.constant 0 : index
    %c0_13 = arith.constant 0 : index
    %c0_14 = arith.constant 0 : index
    %31 = vector.load %arg4[%c0_12, %c0_13, %c0_14] : memref<1x32x32xf32, #tpu.memory_space<vmem>>, vector<1x32x32xf32>
    %32 = vector.shape_cast %31 : vector<1x32x32xf32> to vector<32x32xf32>
    %cst_15 = arith.constant dense<0.000000e+00> : vector<8x32xf32>
    %33 = tpu.matmul %30, %32, %cst_15 {dimension_numbers = #tpu.dot_dimension_numbers<[1], [0], [0], [1], [0, 0, 1, 1], [], []>} : vector<8x32xf32>, vector<32x32xf32>, vector<8x32xf32> -> vector<8x32xf32>
    %c0_16 = arith.constant 0 : index
    %c0_17 = arith.constant 0 : index
    %c0_18 = arith.constant 0 : index
    %34 = vector.load %arg5[%c0_16, %c0_17, %c0_18] : memref<1x1x32xf32, #tpu.memory_space<vmem>>, vector<1x1x32xf32>
    %35 = vector.shape_cast %34 : vector<1x1x32xf32> to vector<1x32xf32>
    %36 = vector.broadcast %35 : vector<1x32xf32> to vector<8x32xf32>
    %37 = arith.addf %33, %36 : vector<8x32xf32>
    %38 = arith.addf %3, %37 : vector<8x32xf32>
    %c0_19 = arith.constant 0 : index
    %c0_20 = arith.constant 0 : index
    %c0_21 = arith.constant 0 : index
    %39 = vector.load %arg6[%c0_19, %c0_20, %c0_21] : memref<1x1x32xf32, #tpu.memory_space<vmem>>, vector<1x1x32xf32>
    %40 = vector.shape_cast %39 : vector<1x1x32xf32> to vector<1x32xf32>
    %c0_22 = arith.constant 0 : index
    %c0_23 = arith.constant 0 : index
    %c0_24 = arith.constant 0 : index
    %41 = vector.load %arg7[%c0_22, %c0_23, %c0_24] : memref<1x1x32xf32, #tpu.memory_space<vmem>>, vector<1x1x32xf32>
    %42 = vector.shape_cast %41 : vector<1x1x32xf32> to vector<1x32xf32>
    %cst_25 = arith.constant dense<0.000000e+00> : vector<8xf32>
    %43 = vector.multi_reduction <add>, %38, %cst_25 [1] : vector<8x32xf32> to vector<8xf32>
    %44 = vector.shape_cast %43 : vector<8xf32> to vector<8x1xf32>
    %cst_26 = arith.constant 3.200000e+01 : f32
    %45 = vector.broadcast %cst_26 : f32 to vector<8x1xf32>
    %46 = arith.divf %44, %45 : vector<8x1xf32>
    %47 = vector.broadcast %46 : vector<8x1xf32> to vector<8x32xf32>
    %48 = arith.subf %38, %47 : vector<8x32xf32>
    %49 = arith.mulf %48, %48 : vector<8x32xf32>
    %cst_27 = arith.constant dense<0.000000e+00> : vector<8xf32>
    %50 = vector.multi_reduction <add>, %49, %cst_27 [1] : vector<8x32xf32> to vector<8xf32>
    %51 = vector.shape_cast %50 : vector<8xf32> to vector<8x1xf32>
    %cst_28 = arith.constant 3.200000e+01 : f32
    %52 = vector.broadcast %cst_28 : f32 to vector<8x1xf32>
    %53 = arith.divf %51, %52 : vector<8x1xf32>
    %54 = vector.broadcast %46 : vector<8x1xf32> to vector<8x32xf32>
    %55 = arith.subf %38, %54 : vector<8x32xf32>
    %cst_29 = arith.constant 9.99999974E-6 : f32
    %56 = vector.broadcast %cst_29 : f32 to vector<8x1xf32>
    %57 = arith.addf %53, %56 : vector<8x1xf32>
    %58 = math.rsqrt %57 : vector<8x1xf32>
    %59 = vector.broadcast %58 : vector<8x1xf32> to vector<8x32xf32>
    %60 = arith.mulf %55, %59 : vector<8x32xf32>
    %61 = vector.broadcast %40 : vector<1x32xf32> to vector<8x32xf32>
    %62 = arith.mulf %60, %61 : vector<8x32xf32>
    %63 = vector.broadcast %42 : vector<1x32xf32> to vector<8x32xf32>
    %64 = arith.addf %62, %63 : vector<8x32xf32>
    %c0_30 = arith.constant 0 : index
    %c0_31 = arith.constant 0 : index
    %c0_32 = arith.constant 0 : index
    %65 = vector.load %arg10[%c0_30, %c0_31, %c0_32] : memref<1x32x64xf32, #tpu.memory_space<vmem>>, vector<1x32x64xf32>
    %66 = vector.shape_cast %65 : vector<1x32x64xf32> to vector<32x64xf32>
    %cst_33 = arith.constant dense<0.000000e+00> : vector<8x64xf32>
    %67 = tpu.matmul %64, %66, %cst_33 {dimension_numbers = #tpu.dot_dimension_numbers<[1], [0], [0], [1], [0, 0, 1, 1], [], []>} : vector<8x32xf32>, vector<32x64xf32>, vector<8x64xf32> -> vector<8x64xf32>
    %c0_34 = arith.constant 0 : index
    %c0_35 = arith.constant 0 : index
    %c0_36 = arith.constant 0 : index
    %68 = vector.load %arg11[%c0_34, %c0_35, %c0_36] : memref<1x1x64xf32, #tpu.memory_space<vmem>>, vector<1x1x64xf32>
    %69 = vector.shape_cast %68 : vector<1x1x64xf32> to vector<1x64xf32>
    %70 = vector.broadcast %69 : vector<1x64xf32> to vector<8x64xf32>
    %71 = arith.addf %67, %70 : vector<8x64xf32>
    %cst_37 = arith.constant 0.000000e+00 : f32
    %72 = vector.broadcast %cst_37 : f32 to vector<8x64xf32>
    %73 = arith.maximumf %71, %72 : vector<8x64xf32>
    %c0_38 = arith.constant 0 : index
    %c0_39 = arith.constant 0 : index
    %c0_40 = arith.constant 0 : index
    %74 = vector.load %arg12[%c0_38, %c0_39, %c0_40] : memref<1x64x32xf32, #tpu.memory_space<vmem>>, vector<1x64x32xf32>
    %75 = vector.shape_cast %74 : vector<1x64x32xf32> to vector<64x32xf32>
    %cst_41 = arith.constant dense<0.000000e+00> : vector<8x32xf32>
    %76 = tpu.matmul %73, %75, %cst_41 {dimension_numbers = #tpu.dot_dimension_numbers<[1], [0], [0], [1], [0, 0, 1, 1], [], []>} : vector<8x64xf32>, vector<64x32xf32>, vector<8x32xf32> -> vector<8x32xf32>
    %c0_42 = arith.constant 0 : index
    %c0_43 = arith.constant 0 : index
    %c0_44 = arith.constant 0 : index
    %77 = vector.load %arg13[%c0_42, %c0_43, %c0_44] : memref<1x1x32xf32, #tpu.memory_space<vmem>>, vector<1x1x32xf32>
    %78 = vector.shape_cast %77 : vector<1x1x32xf32> to vector<1x32xf32>
    %79 = vector.broadcast %78 : vector<1x32xf32> to vector<8x32xf32>
    %80 = arith.addf %76, %79 : vector<8x32xf32>
    %81 = arith.addf %64, %80 : vector<8x32xf32>
    %c0_45 = arith.constant 0 : index
    %c0_46 = arith.constant 0 : index
    %c0_47 = arith.constant 0 : index
    %82 = vector.load %arg8[%c0_45, %c0_46, %c0_47] : memref<1x1x32xf32, #tpu.memory_space<vmem>>, vector<1x1x32xf32>
    %83 = vector.shape_cast %82 : vector<1x1x32xf32> to vector<1x32xf32>
    %c0_48 = arith.constant 0 : index
    %c0_49 = arith.constant 0 : index
    %c0_50 = arith.constant 0 : index
    %84 = vector.load %arg9[%c0_48, %c0_49, %c0_50] : memref<1x1x32xf32, #tpu.memory_space<vmem>>, vector<1x1x32xf32>
    %85 = vector.shape_cast %84 : vector<1x1x32xf32> to vector<1x32xf32>
    %cst_51 = arith.constant dense<0.000000e+00> : vector<8xf32>
    %86 = vector.multi_reduction <add>, %81, %cst_51 [1] : vector<8x32xf32> to vector<8xf32>
    %87 = vector.shape_cast %86 : vector<8xf32> to vector<8x1xf32>
    %cst_52 = arith.constant 3.200000e+01 : f32
    %88 = vector.broadcast %cst_52 : f32 to vector<8x1xf32>
    %89 = arith.divf %87, %88 : vector<8x1xf32>
    %90 = vector.broadcast %89 : vector<8x1xf32> to vector<8x32xf32>
    %91 = arith.subf %81, %90 : vector<8x32xf32>
    %92 = arith.mulf %91, %91 : vector<8x32xf32>
    %cst_53 = arith.constant dense<0.000000e+00> : vector<8xf32>
    %93 = vector.multi_reduction <add>, %92, %cst_53 [1] : vector<8x32xf32> to vector<8xf32>
    %94 = vector.shape_cast %93 : vector<8xf32> to vector<8x1xf32>
    %cst_54 = arith.constant 3.200000e+01 : f32
    %95 = vector.broadcast %cst_54 : f32 to vector<8x1xf32>
    %96 = arith.divf %94, %95 : vector<8x1xf32>
    %97 = vector.broadcast %89 : vector<8x1xf32> to vector<8x32xf32>
    %98 = arith.subf %81, %97 : vector<8x32xf32>
    %cst_55 = arith.constant 9.99999974E-6 : f32
    %99 = vector.broadcast %cst_55 : f32 to vector<8x1xf32>
    %100 = arith.addf %96, %99 : vector<8x1xf32>
    %101 = math.rsqrt %100 : vector<8x1xf32>
    %102 = vector.broadcast %101 : vector<8x1xf32> to vector<8x32xf32>
    %103 = arith.mulf %98, %102 : vector<8x32xf32>
    %104 = vector.broadcast %83 : vector<1x32xf32> to vector<8x32xf32>
    %105 = arith.mulf %103, %104 : vector<8x32xf32>
    %106 = vector.broadcast %85 : vector<1x32xf32> to vector<8x32xf32>
    %107 = arith.addf %105, %106 : vector<8x32xf32>
    %c0_56 = arith.constant 0 : index
    %c0_57 = arith.constant 0 : index
    %108 = vector.load %arg17[%c0_56, %c0_57] : memref<8x32xf32, #tpu.memory_space<vmem>>, vector<8x32xf32>
    tpu.vector_store %arg17[%c0_56, %c0_57], %107 {strides = array<i32>} : memref<8x32xf32, #tpu.memory_space<vmem>>, vector<8x32xf32>,
    %c1_i32 = arith.constant 1 : i32
    %109 = arith.cmpi eq, %arg0, %c1_i32 : i32
    %110 = arith.extui %109 : i1 to i32
    %c0_i32_58 = arith.constant 0 : i32
    %111 = arith.cmpi ne, %110, %c0_i32_58 : i32
    scf.if %111 {
      %112 = vector.extract_strided_slice %107 {offsets = [0, 0], sizes = [1, 32], strides = [1, 1]} : vector<8x32xf32> to vector<1x32xf32>
      %c0_59 = arith.constant 0 : index
      %c0_60 = arith.constant 0 : index
      %113 = vector.load %arg14[%c0_59, %c0_60] : memref<32x1xf32, #tpu.memory_space<vmem>>, vector<32x1xf32>
      %cst_61 = arith.constant dense<0.000000e+00> : vector<1x1xf32>
      %114 = tpu.matmul %112, %113, %cst_61 {dimension_numbers = #tpu.dot_dimension_numbers<[1], [0], [0], [1], [0, 0, 1, 1], [], []>} : vector<1x32xf32>, vector<32x1xf32>, vector<1x1xf32> -> vector<1x1xf32>
      %c0_62 = arith.constant 0 : index
      %c0_63 = arith.constant 0 : index
      %115 = vector.load %arg15[%c0_62, %c0_63] : memref<1x1xf32, #tpu.memory_space<vmem>>, vector<1x1xf32>
      %116 = arith.addf %114, %115 : vector<1x1xf32>
      %c0_64 = arith.constant 0 : index
      %c0_65 = arith.constant 0 : index
      %117 = vector.load %arg16[%c0_64, %c0_65] : memref<1x1xf32, #tpu.memory_space<vmem>>, vector<1x1xf32>
      tpu.vector_store %arg16[%c0_64, %c0_65], %116 {strides = array<i32>} : memref<1x1xf32, #tpu.memory_space<vmem>>, vector<1x1xf32>,
    } else {
    }
    return
  }
  func.func @transform_0(%arg0: i32) -> (i32, i32) {
    %c0_i32 = arith.constant 0 : i32
    %c0_i32_0 = arith.constant 0 : i32
    %c0_i32_1 = arith.constant 0 : i32
    return %c0_i32, %c0_i32_0 : i32, i32
  }
  func.func @transform_1(%arg0: i32) -> (i32, i32, i32) {
    %c0_i32 = arith.constant 0 : i32
    %c0_i32_0 = arith.constant 0 : i32
    %c0_i32_1 = arith.constant 0 : i32
    return %arg0, %c0_i32, %c0_i32_0 : i32, i32, i32
  }
  func.func @transform_2(%arg0: i32) -> (i32, i32, i32) {
    %c0_i32 = arith.constant 0 : i32
    %c0_i32_0 = arith.constant 0 : i32
    %c0_i32_1 = arith.constant 0 : i32
    return %arg0, %c0_i32, %c0_i32_0 : i32, i32, i32
  }
  func.func @transform_3(%arg0: i32) -> (i32, i32, i32) {
    %c0_i32 = arith.constant 0 : i32
    %c0_i32_0 = arith.constant 0 : i32
    %c0_i32_1 = arith.constant 0 : i32
    return %arg0, %c0_i32, %c0_i32_0 : i32, i32, i32
  }
  func.func @transform_4(%arg0: i32) -> (i32, i32, i32) {
    %c0_i32 = arith.constant 0 : i32
    %c0_i32_0 = arith.constant 0 : i32
    %c0_i32_1 = arith.constant 0 : i32
    return %arg0, %c0_i32, %c0_i32_0 : i32, i32, i32
  }
  func.func @transform_5(%arg0: i32) -> (i32, i32, i32) {
    %c0_i32 = arith.constant 0 : i32
    %c0_i32_0 = arith.constant 0 : i32
    %c0_i32_1 = arith.constant 0 : i32
    return %arg0, %c0_i32, %c0_i32_0 : i32, i32, i32
  }
  func.func @transform_6(%arg0: i32) -> (i32, i32, i32) {
    %c0_i32 = arith.constant 0 : i32
    %c0_i32_0 = arith.constant 0 : i32
    %c0_i32_1 = arith.constant 0 : i32
    return %arg0, %c0_i32, %c0_i32_0 : i32, i32, i32
  }
  func.func @transform_7(%arg0: i32) -> (i32, i32, i32) {
    %c0_i32 = arith.constant 0 : i32
    %c0_i32_0 = arith.constant 0 : i32
    %c0_i32_1 = arith.constant 0 : i32
    return %arg0, %c0_i32, %c0_i32_0 : i32, i32, i32
  }
  func.func @transform_8(%arg0: i32) -> (i32, i32, i32) {
    %c0_i32 = arith.constant 0 : i32
    %c0_i32_0 = arith.constant 0 : i32
    %c0_i32_1 = arith.constant 0 : i32
    return %arg0, %c0_i32, %c0_i32_0 : i32, i32, i32
  }
  func.func @transform_9(%arg0: i32) -> (i32, i32, i32) {
    %c0_i32 = arith.constant 0 : i32
    %c0_i32_0 = arith.constant 0 : i32
    %c0_i32_1 = arith.constant 0 : i32
    return %arg0, %c0_i32, %c0_i32_0 : i32, i32, i32
  }
  func.func @transform_10(%arg0: i32) -> (i32, i32, i32) {
    %c0_i32 = arith.constant 0 : i32
    %c0_i32_0 = arith.constant 0 : i32
    %c0_i32_1 = arith.constant 0 : i32
    return %arg0, %c0_i32, %c0_i32_0 : i32, i32, i32
  }
  func.func @transform_11(%arg0: i32) -> (i32, i32, i32) {
    %c0_i32 = arith.constant 0 : i32
    %c0_i32_0 = arith.constant 0 : i32
    %c0_i32_1 = arith.constant 0 : i32
    return %arg0, %c0_i32, %c0_i32_0 : i32, i32, i32
  }
  func.func @transform_12(%arg0: i32) -> (i32, i32, i32) {
    %c0_i32 = arith.constant 0 : i32
    %c0_i32_0 = arith.constant 0 : i32
    %c0_i32_1 = arith.constant 0 : i32
    return %arg0, %c0_i32, %c0_i32_0 : i32, i32, i32
  }
  func.func @transform_13(%arg0: i32) -> (i32, i32) {
    %c0_i32 = arith.constant 0 : i32
    %c0_i32_0 = arith.constant 0 : i32
    %c0_i32_1 = arith.constant 0 : i32
    return %c0_i32, %c0_i32_0 : i32, i32
  }
  func.func @transform_14(%arg0: i32) -> (i32, i32) {
    %c0_i32 = arith.constant 0 : i32
    %c0_i32_0 = arith.constant 0 : i32
    %c0_i32_1 = arith.constant 0 : i32
    return %c0_i32, %c0_i32_0 : i32, i32
  }
  func.func @transform_15(%arg0: i32) -> (i32, i32) {
    %c0_i32 = arith.constant 0 : i32
    %c0_i32_0 = arith.constant 0 : i32
    %c0_i32_1 = arith.constant 0 : i32
    return %c0_i32, %c0_i32_0 : i32, i32
  }
}

</mosaic_0001>

<bundles_post_ra>
// kernel: standard_transformer_forward.1
= control target key start
LH: loop header
LB: loop body
LE: loop exit
PB: predicated region body
PF: predicated region fallthrough
CT: control target
= control target key end

     0   :  { %s2577_s0 = inlined_call_operand.vmem [shape: f32[8,32], index: 0, kind: input, shape index: {}]   ;;  %s2578_s1 = inlined_call_operand.vmem [shape: f32[2,32,96], index: 1, kind: input, shape index: {}]   ;;  %s2579_s2 = inlined_call_operand.vmem [shape: f32[2,1,96], index: 2, kind: input, shape index: {}]   ;;  %s2580_s3 = inlined_call_operand.vmem [shape: f32[2,32,32], index: 3, kind: input, shape index: {}]   ;;  %s2581_s4 = inlined_call_operand.vmem [shape: f32[2,1,32], index: 4, kind: input, shape index: {}]   ;;  %s2582_s5 = inlined_call_operand.vmem [shape: f32[2,1,32], index: 5, kind: input, shape index: {}]   ;;  %s2583_s6 = inlined_call_operand.vmem [shape: f32[2,1,32], index: 6, kind: input, shape index: {}]   ;;  %s2584_s7 = inlined_call_operand.vmem [shape: f32[2,1,32], index: 7, kind: input, shape index: {}]   ;;  %s2585_s8 = inlined_call_operand.vmem [shape: f32[2,1,32], index: 8, kind: input, shape index: {}]   ;;  %s2586_s9 = inlined_call_operand.vmem [shape: f32[2,32,64], index: 9, kind: input, shape index: {}]   ;;  %s2587_s10 = inlined_call_operand.vmem [shape: f32[2,1,64], index: 10, kind: input, shape index: {}]   ;;  %s2588_s11 = inlined_call_operand.vmem [shape: f32[2,64,32], index: 11, kind: input, shape index: {}]   ;;  %s2589_s12 = inlined_call_operand.vmem [shape: f32[2,1,32], index: 12, kind: input, shape index: {}]   ;;  %s2590_s13 = inlined_call_operand.vmem [shape: f32[32,1], index: 13, kind: input, shape index: {}]   ;;  %s2591_s14 = inlined_call_operand.<no memory space> [shape: f32[1,1], index: 14, kind: input, shape index: {}]   ;;  %s2592_s15 = inlined_call_operand.hbm [shape: f32[1,1], index: 15, kind: output, shape index: {}]  }
   0x1   :  { %2597 = sst [smem:[#allocation9_spill]] %s2577_s0  ;;  %v20_v0 = vstv %s2591_s14 }
   0x2   :  { %2598 = sst [smem:[#allocation10_spill]] %s2578_s1  ;;  %21 = vst [vmem:[#allocation3] sm:$0x1] %v20_v0 }
   0x3   :  { %2599 = sst [smem:[#allocation11_spill]] %s2580_s3 }
   0x4   :  { %2600 = sst [smem:[#allocation12_spill]] %s2590_s13 }
   0x5   :  { %2601 = sst [smem:[#allocation13_spill]] %s2592_s15 }
   0x6   :  { %22 = vsyncpa [#allocation5], 0  ;;  %s2358_s20 = smov 0  }
   0x7 LB: > { %2602 = sst [smem:[#allocation7_spill]] %s2260_s20  ;;  %s2364_s21 = sadd.s32 4294967295, %s2260_s20   ;;  %s2260_s20 = sphi %s2358_s20, %s28_s20  }
   0x8   : > { %p1973_p0 = scmp.ge.s32.totalorder %s2260_s20, 1  ;;  %p529_p1 = scmp.lt.s32.totalorder %s2260_s20, 3 }
   0xa   : > { %p530_p2 = pnand %p1973_p0, %p529_p1 }
   0xc   : > { %533 = sbr.rel (%p530_p2) target bundleno = 3174 (0xc66), region = 80 }
  0x13   : > { %p611_p3 = scmp.lt.s32.totalorder %s2364_s21, 1  ;;  %s2603_s1 = sld [smem:[#allocation10_spill]] }
  0x14   : > { %s2604_s3 = sld [smem:[#allocation11_spill]]  ;;  %p1982_p4 = scmp.ne.s32.totalorder %s2364_s21, 0 }
  0x15   : > { %s2370_s14 = scalar_select %p611_p3, %s2364_s21, 1 }
  0x16   : > { %658 = sbr.rel (%p1982_p4) target bundleno = 37 (0x25), region = 84  ;;  %vm660_vm0 = vcmask (!%p1982_p4), 261120  }
  0x17   : > { %s2011_s22 = sshll.u32 %s2370_s14, 5  ;;  %s626_s19 = scalar_lea.vmem %s2581_s4, %s2370_s14 }
  0x18   : > { %s635_s27 = scalar_lea.vmem %s2584_s7, %s2370_s14  ;;  %s638_s30 = scalar_lea.vmem %s2585_s8, %s2370_s14 }
  0x19   : > { %s615_s28 = scalar_lea.vmem %s2603_s1, %s2011_s22  ;;  %s2408_s17 = scalar_lea.vmem %s2586_s9, %s2011_s22 }
  0x1a   : > { %s2383_s16 = scalar_lea.vmem %s2604_s3, %s2011_s22  ;;  %s646_s20 = scalar_lea.vmem %s2587_s10, %s2370_s14 }
  0x1b   : > { %2605 = sst [smem:[#allocation8_spill]] %s2383_s16  ;;  %s2014_s13 = sshll.u32 %s2370_s14, 6 }
  0x1c   : > { %s2418_s24 = scalar_lea.vmem %s2588_s11, %s2014_s13  ;;  %s654_s1 = scalar_lea.vmem %s2589_s12, %s2370_s14 }
  0x1d   : > { %s2606_s16 = sld [smem:[#allocation9_spill]] }
  0x23   : > { %v659_v1 = vld [vmem:[%s2606_s16] sm:$0xff] }
  0x24   : > { %661 = vst.msk [vmem:[#allocation2] sm:$0xff] %vm660_vm0, %v659_v1 }
  0x25 PF: > { %v663_v2 = vld [vmem:[%s615_s28] sm:$0xff]  ;;  %v664_v3 = vld [vmem:[%s615_s28 + $0x8] sm:$0xff]  ;;  %v665_v4 = vld [vmem:[%s615_s28 + $0x10] sm:$0xff]  ;;  %v2262_v5 = vmov 0.0|0.0   ;;  %vm2263_vm1 = vmmov 0   ;;  %v2264_v8 = vmov 0.0   ;;  %s2607_s29 = scalar_lea.vmem %s2579_s2, %s2370_s14  ;;  %v1295_v0 = vlaneseq  ;;  %s2609_s22 = scalar_lea.vmem %s2582_s5, %s2370_s14 }
  0x26   : > { %2143 = vmatprep.subr.bf16.mxu1 %v2262_v5  ;;  %v2144_v6 = vpack.c.bf16 %v664_v3, %v663_v2  ;;  %v666_v7 = vld [vmem:[%s615_s28 + $0x18] sm:$0xff]  ;;  %2064 = vmatprep.mubr.msk.f32.mxu1 %vm2263_vm1, %v2264_v8  ;;  %vm674_vm2 = vcmask 261120   ;;  %v1983_v11 = vld [vmem:[%s2607_s29] ss:$0 sm:$0xff]  ;;  %s2265_s18 = smov 112   ;;  %s2266_s15 = smov 96  }
  0x27   : > { %v2147_v9 = vpack.c.bf16 %v666_v7, %v665_v4  ;;  %vm821_vm3 = vcmask 130048   ;;  %vm966_vm4 = vcmask 64512   ;;  %s2267_s0 = smov 64   ;;  %s2608_s23 = sld [smem:[#allocation8_spill]]  ;;  %v2268_v62 = vmov 1983009808  }
  0x28   : > { %2145 = vmatpush3.bf16.msra.mxu1 %v2144_v6  ;;  %v1293_v63 = vunpack.c.l.s4 %v2268_v62  ;;  %v1296_v2 = vshrl.u32 %v1295_v0, 7  ;;  %v2269_v3 = vmov 1934713408   ;;  %s2270_s25 = smov 16   ;;  %v1615_v62 = vld [vmem:[%s2418_s24 + $0x18] sm:$0xff]  ;;  %v1616_v0 = vld [vmem:[%s2418_s24 + $0x20] sm:$0xff]  ;;  %s2610_s28 = scalar_lea.vmem %s2583_s6, %s2370_s14 }
  0x29   : > { %2146 = vmatprep.subr.bf16.mxu1 %v2262_v5  ;;  %v1324_v4 = vunpack.c.l.s4 %v2269_v3  ;;  %vm1627_vm5 = vcmask 523264   ;;  %p2005_p5 = scmp.ne.s32.totalorder %s2364_s21, 1 }
  0x2a   : > { %v1294_v1 = vunpack.c.0.s8 %v1293_v63  ;;  %s2611_s3 = sld [smem:[#allocation12_spill]] (!%p2005_p5)  ;;  %vm2272_vm6 = vmmov (!%p2005_p5), 0   ;;  %vm1814_vm7 = vcmask (!%p2005_p5), 0  }
  0x2b   : > { %v2432_v10 = vld [vmem:[#allocation2] sm:$0xff] }
  0x2c   : > { %2148 = vmatpush3.bf16.msra.mxu1 %v2147_v9  ;;  %v1297_v7 = vsub.s32 %v1294_v1, %v1296_v2  ;;  %v1325_v9 = vunpack.c.0.s8 %v1324_v4  ;;  %v1617_v1 = vld [vmem:[%s2418_s24 + $0x28] sm:$0xff] }
  0x2d   : > { %2149 = vmatprep.subr.bf16.mxu1 %v2262_v5  ;;  %v1412_v56 = vld [vmem:[%s2608_s23] sm:$0xff]  ;;  %v1413_v57 = vld [vmem:[%s2608_s23 + $0x8] sm:$0xff]  ;;  %v1414_v58 = vld [vmem:[%s2608_s23 + $0x10] sm:$0xff] }
  0x2e   : > { %v2156_v59 = vpack.c.bf16 %v1413_v57, %v1412_v56  ;;  %v1415_v60 = vld [vmem:[%s2608_s23 + $0x18] sm:$0xff] }
  0x2f   : > { %2065 = vmatmul.mubr.msk.f32.vlgmr.msra.gmra.mrb[0].mxu1 %vm674_vm2, %v2432_v10  ;;  %v2159_v61 = vpack.c.bf16 %v1415_v60, %v1414_v58  ;;  %v1530_v56 = vld [vmem:[%s2408_s17 + $0x18] sm:$0xff]  ;;  %v1612_v58 = vld [vmem:[%s2418_s24] sm:$0xff]  ;;  %v1614_v60 = vld [vmem:[%s2418_s24 + $0x10] sm:$0xff] }
  0x30   : > { %2071 = vmatprep.mubr.msk.f32.mxu1 %vm2263_vm1, %v2264_v8  ;;  %v2171_v63 = vpack.c.bf16 %v1615_v62, %v1614_v60 }
 0x102   : > { %v744_v12 = vpop.f32.mrb[0].mxu1 }
 0x103   : > { %v745_v13 = vadd.f32 %v1983_v11, %v744_v12  ;;  %v2066_v14 = vpop.f32.mrb[1].mxu1 }
 0x105   : > { %749 = vrot.lane.b32.xlu0 %v745_v13, %s2265_s18 }
 0x109   : > { %751 = vrot.lane.b32.xlu0 %v745_v13, %s2266_s15 }
 0x177   : > { %v750_v15 = vpop.permute.xlu0 %749 }
 0x178   : > { %753 = vrot.lane.b32.xlu1 %v750_v15, %s2266_s15 }
 0x17b   : > { %v752_v16 = vpop.permute.xlu0 %751 }
 0x1a1   : > { %757 = vxpose.xlu1.b32.start.end [1/1] (short) (narrow) %v752_v16, 16  ;;  %v1328_v16 = vsub.s32 %v1325_v9, %v1296_v2  ;;  %v2174_v2 = vpack.c.bf16 %v1617_v1, %v1616_v0  ;;  %v1997_v9 = vld [vmem:[%s2609_s22] ss:$0 sm:$0xff] }
 0x1ea   : > { %v754_v17 = vpop.permute.xlu1 %753 }
 0x1eb   : > { %789 = vxpose.xlu0.b32.start.end [1/1] (short) (narrow) %v754_v17, 16 }
 0x221   : > { %v773_v18 = vpop.trf.xlu1 }
 0x225   : > { %v774_v19 = vpop.trf.xlu1 }
 0x226   : > { %v2150_v20 = vpack.c.bf16 %v774_v19, %v773_v18 }
 0x228   : > { %2151 = vmatpush3.bf16.msra.mxu1 %v2150_v20 }
 0x229   : > { %2152 = vmatprep.subr.bf16.mxu1 %v2262_v5 }
 0x22b   : > { %2072 = vmatmul.mubr.msk.f32.vlgmr.msra.gmra.mrb[2].mxu1 %vm821_vm3, %v745_v13 }
 0x22c   : > { %2078 = vmatprep.mubr.msk.f32.mxu1 %vm2263_vm1, %v2264_v8 }
 0x26b   : > { %v805_v21 = vpop.trf.xlu0 }
 0x26f   : > { %v806_v22 = vpop.trf.xlu0 }
 0x270   : > { %v2153_v23 = vpack.c.bf16 %v806_v22, %v805_v21 }
 0x272   : > { %2154 = vmatpush3.bf16.msra.mxu1 %v2153_v23 }
 0x275   : > { %2079 = vmatmul.mubr.msk.f32.vlgmr.msra.gmra.mrb[4].mxu1 %vm821_vm3, %v750_v15 }
 0x2fe   : > { %v890_v24 = vpop.f32.mrb[2].mxu1 }
 0x2ff   : > { %v2073_v25 = vpop.f32.mrb[3].mxu1  ;;  %v967_v26 = vsel %vm966_vm4, %v890_v24, -inf }
 0x300   : > { %968 = vmax.xlane.f32.xlu0 %v967_v26 }
 0x316   : > { %989 = vrot.lane.b32.xlu0 %v745_v13, %s2267_s0 }
 0x348   : > { %v962_v27 = vpop.f32.mrb[4].mxu1 }
 0x349   : > { %v2080_v28 = vpop.f32.mrb[5].mxu1  ;;  %v970_v29 = vsel %vm966_vm4, %v962_v27, -inf }
 0x34a   : > { %971 = vmax.xlane.f32.xlu1 %v970_v29 }
 0x35b   : > { %991 = vrot.lane.b32.xlu1 %v750_v15, %s2267_s0 }
 0x38d   : > { %v969_v30 = vpop.xlane.xlu0 %968 }
 0x38e   : > { %v973_v31 = vsub.f32 %v890_v24, %v969_v30 }
 0x390   : > { %v975_v32 = vmul.f32 1.442695, %v973_v31 }
 0x391   : > { %v990_v41 = vpop.permute.xlu0 %989 }
 0x392   : > { %2212 = vpow2.f32 %v975_v32 }
 0x39c   : > { %v2213_v33 = vpop.eup %2212 }
 0x39d   : > { %v979_v34 = vsel %vm966_vm4, %v2213_v33, 0.0 }
 0x39e   : > { %980 = vadd.xlane.f32.xlu1 %v979_v34 }
 0x3d7   : > { %v972_v35 = vpop.xlane.xlu1 %971 }
 0x3d8   : > { %v974_v36 = vsub.f32 %v962_v27, %v972_v35 }
 0x3da   : > { %v977_v37 = vmul.f32 1.442695, %v974_v36 }
 0x3db   : > { %v992_v38 = vpop.permute.xlu1 %991 }
 0x3dc   : > { %2214 = vpow2.f32 %v977_v37  ;;  %1027 = vxpose.xlu1.b32.start.end [1/1] (short) (narrow) %v992_v38, 16 }
 0x3e6   : > { %v2215_v39 = vpop.eup %2214 }
 0x3e7   : > { %v982_v40 = vsel %vm966_vm4, %v2215_v39, 0.0 }
 0x3e8   : > { %983 = vadd.xlane.f32.xlu0 %v982_v40 }
 0x415   : > { %995 = vxpose.xlu0.b32.start.end [1/1] (short) (narrow) %v990_v41, 16 }
 0x42b   : > { %v981_v42 = vpop.xlane.xlu1 %980 }
 0x42c   : > { %2216 = vrcp.f32 %v981_v42 }
 0x436   : > { %v2217_v43 = vpop.eup %2216 }
 0x437   : > { %v987_v44 = vmul.f32 %v2217_v43, %v2213_v33  ;;  %v1995_v43 = vld [vmem:[%s626_s19] ss:$0 sm:$0xff] }
 0x439   : > { %2081 = vmatprep.subr.msk.mxu0 %vm966_vm4, %v987_v44 }
 0x43a   : > { %2082 = vmatpush3.xpose.msk.msra.mxu0 %vm966_vm4, %v987_v44 }
 0x43b   : > { %2155 = vmatprep.subr.bf16.mxu0 %v2262_v5 }
 0x45c   : > { %v1043_v45 = vpop.trf.xlu1 }
 0x45d   : > { %2088 = vmatprep.mubr.msk.f32.mxu1 %vm966_vm4, %v1043_v45 }
 0x460   : > { %v1044_v49 = vpop.trf.xlu1 }
 0x475   : > { %v984_v46 = vpop.xlane.xlu0 %983 }
 0x476   : > { %2218 = vrcp.f32 %v984_v46 }
 0x480   : > { %v2219_v47 = vpop.eup %2218 }
 0x481   : > { %v988_v48 = vmul.f32 %v2219_v47, %v2215_v39 }
 0x483   : > { %2086 = vmatprep.subr.msk.mxu1 %vm966_vm4, %v988_v48 }
 0x484   : > { %2087 = vmatpush3.xpose.msk.msra.mxu1 %vm966_vm4, %v988_v48 }
 0x485   : > { %2161 = vmatprep.subr.bf16.mxu1 %v2262_v5 }
 0x487   : > { %2089 = vmatmul.mubr.msk.f32.vlgmr.msra.gmra.mrb[6].mxu1 %vm966_vm4, %v1044_v49 }
 0x488   : > { %2110 = vmatprep.mubr.msk.f32.mxu1 %vm2263_vm1, %v2264_v8 }
 0x495   : > { %v1011_v50 = vpop.trf.xlu0 }
 0x496   : > { %2083 = vmatprep.mubr.msk.f32.mxu0 %vm966_vm4, %v1011_v50 }
 0x499   : > { %v1012_v51 = vpop.trf.xlu0 }
 0x49a   : > { %2084 = vmatmul.mubr.msk.f32.vlgmr.msra.gmra.mrb[0].mxu0 %vm966_vm4, %v1012_v51 }
 0x49b   : > { %2099 = vmatprep.mubr.msk.f32.mxu0 %vm2263_vm1, %v2264_v8  ;;  %2157 = vmatpush3.bf16.msra.mxu0 %v2156_v59  ;;  %v1613_v59 = vld [vmem:[%s2418_s24 + $0x8] sm:$0xff] }
 0x49c   : > { %2158 = vmatprep.subr.bf16.mxu0 %v2262_v5 }
 0x49f   : > { %2160 = vmatpush3.bf16.msra.mxu0 %v2159_v61  ;;  %v2168_v61 = vpack.c.bf16 %v1613_v59, %v1612_v58 }
 0x4a0   : > { %2167 = vmatprep.subr.bf16.mxu0 %v2262_v5 }
 0x55a   : > { %v2090_v52 = vpop.f32.mrb[6].mxu1 }
 0x55b   : > { %v1218_v53 = vpop.f32.mrb[7].mxu1 }
 0x55c   : > { %1259 = vxpose.xlu1.b32.start [1/2] (short) (narrow) %v1218_v53, 8  ;;  %v1527_v53 = vld [vmem:[%s2408_s17] sm:$0xff] }
 0x560   : > { %1260 = vxpose.xlu1.b32.end [2/2] (short) (narrow) %v2090_v52, 8 }
 0x56d   : > { %v2085_v54 = vpop.f32.mrb[0].mxu0 }
 0x56e   : > { %v1134_v55 = vpop.f32.mrb[1].mxu0 }
 0x56f   : > { %1227 = vxpose.xlu0.b32.start [1/2] (short) (narrow) %v1134_v55, 8 }
 0x573   : > { %1228 = vxpose.xlu0.b32.end [2/2] (short) (narrow) %v2085_v54, 8  ;;  %v1528_v54 = vld [vmem:[%s2408_s17 + $0x8] sm:$0xff] }
 0x574   : > { %v2162_v55 = vpack.c.bf16 %v1528_v54, %v1527_v53 }
 0x576   : > { %2163 = vmatpush3.bf16.msra.mxu1 %v2162_v55 }
 0x577   : > { %2164 = vmatprep.subr.bf16.mxu1 %v2262_v5 }
 0x5dc   : > { %v1275_v6 = vpop.trf.xlu1 }
 0x5dd   : > { %v1306_v11 = vcombine.high %v1275_v6, %v2264_v8  ;;  %v1313_v12 = vrot.slane %v1275_v6, %v1297_v7 }
 0x5df   : > { %v1320_v17 = vrot.slane %v1306_v11, %v1297_v7 }
 0x5ef   : > { %v1243_v13 = vpop.trf.xlu0 }
 0x5f0   : > { %v1291_v14 = vcombine.high %v1243_v13, %v2264_v8  ;;  %v1298_v15 = vrot.slane %v1243_v13, %v1297_v7 }
 0x5f2   : > { %v1305_v18 = vrot.slane %v1291_v14, %v1297_v7  ;;  %v1321_v19 = vcombine.low %v1298_v15, %v1313_v12  ;;  %v1322_v20 = vcombine.high %v1298_v15, %v1313_v12  ;;  %v1998_v12 = vld [vmem:[%s2610_s28] ss:$0 sm:$0xff]  ;;  %v1618_v14 = vld [vmem:[%s2418_s24 + $0x30] sm:$0xff]  ;;  %v1619_v15 = vld [vmem:[%s2418_s24 + $0x38] sm:$0xff] }
 0x5f4   : > { %v1329_v21 = vrot.slane %v1321_v19, %v1328_v16  ;;  %v1336_v22 = vrot.slane %v1322_v20, %v1328_v16  ;;  %v1337_v23 = vcombine.low %v1305_v18, %v1320_v17  ;;  %v1338_v24 = vcombine.high %v1305_v18, %v1320_v17  ;;  %v1999_v17 = vld [vmem:[%s646_s20] ss:$0 sm:$0xff] }
 0x5f6   : > { %v1345_v25 = vrot.slane %v1337_v23, %v1328_v16  ;;  %v1352_v26 = vrot.slane %v1338_v24, %v1328_v16  ;;  %v1357_v27 = vcombine.low %v1329_v21, %v1336_v22  ;;  %v1993_v28 = vcombine.high %v1329_v21, %v1336_v22  ;;  %v2001_v22 = vld [vmem:[%s654_s1] ss:$0 sm:$0xff] }
 0x5f8   : > { %v1364_v29 = vrot.slane %v1357_v27, %v1297_v7  ;;  %v1372_v30 = vrot.slane %v1993_v28, %v1297_v7  ;;  %v1373_v31 = vcombine.low %v1345_v25, %v1352_v26  ;;  %v1994_v32 = vcombine.high %v1345_v25, %v1352_v26 }
 0x5fa   : > { %v1380_v33 = vrot.slane %v1373_v31, %v1297_v7  ;;  %v1388_v34 = vrot.slane %v1994_v32, %v1297_v7  ;;  %v1389_v35 = vcombine.low %v1364_v29, %v1372_v30 }
 0x5fc   : > { %v1397_v36 = vcombine.low %v1380_v33, %v1388_v34  ;;  %v1396_v37 = vrot.slane %v1389_v35, %v1328_v16 }
 0x5fe   : > { %v1404_v38 = vrot.slane %v1397_v36, %v1328_v16  ;;  %v2177_v16 = vpack.c.bf16 %v1619_v15, %v1618_v14 }
 0x600   : > { %v1406_v39 = vcombine.high %v1396_v37, %v1404_v38  ;;  %v1405_v40 = vcombine.low %v1396_v37, %v1404_v38  ;;  %v2003_v37 = vld [vmem:[%s635_s27] ss:$0 sm:$0xff] }
 0x602   : > { %1408 = vrot.lane.b32.xlu0 %v1406_v39, %s2270_s25  ;;  %v2004_v39 = vld [vmem:[%s638_s30] ss:$0 sm:$0xff] }
 0x674   : > { %v1409_v41 = vpop.permute.xlu0 %1408 }
 0x675   : > { %v1411_v42 = vsel %vm821_vm3, %v1405_v40, %v1409_v41 }
 0x676   : > { %2100 = vmatmul.mubr.msk.f32.vlgmr.msra.gmra.mrb[2].mxu0 %vm674_vm2, %v1411_v42  ;;  %v1736_v42 = vld [vmem:[%s2611_s3] sm:$0xff] (!%p2005_p5) }
 0x677   : > { %2129 = vmatprep.mubr.msk.f32.mxu0 %vm2263_vm1, %v2264_v8  ;;  %2169 = vmatpush3.bf16.msra.mxu0 %v2168_v61 }
 0x678   : > { %2170 = vmatprep.subr.bf16.mxu0 %v2262_v5 }
 0x67b   : > { %2172 = vmatpush3.bf16.msra.mxu0 %v2171_v63 }
 0x67c   : > { %2173 = vmatprep.subr.bf16.mxu0 %v2262_v5 }
 0x67f   : > { %2175 = vmatpush3.bf16.msra.mxu0 %v2174_v2 }
 0x680   : > { %2176 = vmatprep.subr.bf16.mxu0 %v2262_v5 }
 0x683   : > { %2178 = vmatpush3.bf16.msra.mxu0 %v2177_v16 }
 0x749   : > { %v1492_v44 = vpop.f32.mrb[2].mxu0 }
 0x74a   : > { %v1493_v45 = vadd.f32 %v1995_v43, %v1492_v44  ;;  %v2101_v46 = vpop.f32.mrb[3].mxu0  ;;  %v1737_v43 = vld [vmem:[%s2611_s3 + $0x8] sm:$0xff] (!%p2005_p5)  ;;  %v1738_v44 = vld [vmem:[%s2611_s3 + $0x10] sm:$0xff] (!%p2005_p5) }
 0x74b   : > { %v2180_v46 = vpack.c.bf16 (!%p2005_p5), %v1737_v43, %v1736_v42 }
 0x74c   : > { %v1496_v47 = vadd.f32 %v1493_v45, %v2432_v10  ;;  %v1529_v10 = vld [vmem:[%s2408_s17 + $0x10] sm:$0xff]  ;;  %v2271_v45 = vmov (!%p2005_p5), 0.0|0.0  }
 0x74d   : > { %v2165_v57 = vpack.c.bf16 %v1530_v56, %v1529_v10  ;;  %2179 = vmatprep.subr.bf16.mxu0 (!%p2005_p5), %v2271_v45 }
 0x74e   : > { %v1499_v48 = vsel %vm674_vm2, %v1496_v47, 0.0 }
 0x74f   : > { %1500 = vadd.xlane.f32.xlu1 %v1499_v48  ;;  %2166 = vmatpush3.bf16.msra.mxu1 %v2165_v57  ;;  %v2273_v48 = vmov (!%p2005_p5), 0.0  }
 0x7dc   : > { %v1501_v49 = vpop.xlane.xlu1 %1500 }
 0x7dd   : > { %v1503_v50 = vmul.f32 0.03125, %v1501_v49 }
 0x7df   : > { %v1504_v8 = vsub.f32 %v1496_v47, %v1503_v50  ;;  %v1739_v47 = vld [vmem:[%s2611_s3 + $0x18] sm:$0xff] (!%p2005_p5)  ;;  %v1740_v50 = vld [vmem:[#allocation3] sm:$0x1] (!%p2005_p5) }
 0x7e0   : > { %v2183_v49 = vpack.c.bf16 (!%p2005_p5), %v1739_v47, %v1738_v44 }
 0x7e1   : > { %v1505_v51 = vmul.f32 %v1504_v8, %v1504_v8 }
 0x7e3   : > { %v1506_v52 = vsel %vm674_vm2, %v1505_v51, 0.0 }
 0x7e4   : > { %1507 = vadd.xlane.f32.xlu0 %v1506_v52 }
 0x871   : > { %v1508_v3 = vpop.xlane.xlu0 %1507 }
 0x872   : > { %v1509_v4 = vmul.f32 0.03125, %v1508_v3 }
 0x874   : > { %v1510_v6 = vadd.f32 1e-05, %v1509_v4 }
 0x876   : > { %2220 = vrsqrt.f32 %v1510_v6 }
 0x880   : > { %v2221_v7 = vpop.eup %2220 }
 0x881   : > { %v1512_v11 = vmul.f32 %v2221_v7, %v1504_v8 }
 0x883   : > { %v1519_v13 = vmul.f32 %v1997_v9, %v1512_v11 }
 0x885   : > { %v1526_v5 = vadd.f32 %v1998_v12, %v1519_v13 }
 0x887   : > { %2111 = vmatmul.mubr.msk.f32.vlgmr.msra.gmra.mrb[8].mxu1 %vm674_vm2, %v1526_v5 }
 0x95a   : > { %v1607_v18 = vpop.f32.mrb[8].mxu1 }
 0x95b   : > { %v1608_v19 = vadd.f32 %v1999_v17, %v1607_v18  ;;  %v2112_v20 = vpop.f32.mrb[9].mxu1 }
 0x95d   : > { %v1611_v21 = vmax.f32 %v1608_v19, 0.0 }
 0x95f   : > { %2130 = vmatmul.mubr.msk.f32.vlgmr.msra.gmra.mrb[4].mxu0 %vm1627_vm5, %v1611_v21 }
 0x960   : > { %2140 = vmatprep.mubr.msk.f32.mxu0 (!%p2005_p5), %vm2272_vm6, %v2273_v48  ;;  %2181 = vmatpush3.bf16.msra.mxu0 (!%p2005_p5), %v2180_v46 }
 0x961   : > { %2182 = vmatprep.subr.bf16.mxu0 (!%p2005_p5), %v2271_v45 }
 0x964   : > { %2184 = vmatpush3.bf16.msra.mxu0 (!%p2005_p5), %v2183_v49 }
 0xa32   : > { %v1697_v23 = vpop.f32.mrb[4].mxu0 }
 0xa33   : > { %v1698_v24 = vadd.f32 %v2001_v22, %v1697_v23  ;;  %v2131_v25 = vpop.f32.mrb[5].mxu0 }
 0xa35   : > { %v1701_v26 = vadd.f32 %v1698_v24, %v1526_v5 }
 0xa37   : > { %v1704_v27 = vsel %vm674_vm2, %v1701_v26, 0.0 }
 0xa38   : > { %1705 = vadd.xlane.f32.xlu1 %v1704_v27 }
 0xac5   : > { %v1706_v28 = vpop.xlane.xlu1 %1705 }
 0xac6   : > { %v1707_v29 = vmul.f32 0.03125, %v1706_v28 }
 0xac8   : > { %v1708_v30 = vsub.f32 %v1701_v26, %v1707_v29 }
 0xaca   : > { %v1709_v31 = vmul.f32 %v1708_v30, %v1708_v30 }
 0xacc   : > { %v1710_v32 = vsel %vm674_vm2, %v1709_v31, 0.0 }
 0xacd   : > { %1711 = vadd.xlane.f32.xlu1 %v1710_v32 }
 0xb5a   : > { %v1712_v33 = vpop.xlane.xlu1 %1711 }
 0xb5b   : > { %v1713_v34 = vmul.f32 0.03125, %v1712_v33 }
 0xb5d   : > { %v1714_v35 = vadd.f32 1e-05, %v1713_v34 }
 0xb5f   : > { %2222 = vrsqrt.f32 %v1714_v35 }
 0xb69   : > { %v2223_v36 = vpop.eup %2222 }
 0xb6a   : > { %v1716_v38 = vmul.f32 %v2223_v36, %v1708_v30  ;;  %1735 = sbr.rel (%p2005_p5) target bundleno = 3143 (0xc47), region = 88 }
 0xb6c   : > { %v1723_v40 = vmul.f32 %v2003_v37, %v1716_v38 }
 0xb6e   : > { %v1730_v41 = vadd.f32 %v2004_v39, %v1723_v40 }
 0xb70   : > { %1731 = vst.msk [vmem:[#allocation2] sm:$0xff] %vm674_vm2, %v1730_v41  ;;  %2141 = vmatmul.mubr.msk.f32.vlgmr.msra.gmra.mrb[0].mxu0 (!%p2005_p5), %vm674_vm2, %v1730_v41 }
 0xc43   : > { %v1810_v8 = vpop.f32.mrb[0].mxu0 }
 0xc44   : > { %v1811_v51 = vadd.f32 %v1810_v8, %v1740_v50  ;;  %v2142_v52 = vpop.f32.mrb[1].mxu0 }
 0xc46   : > { %1815 = vst.msk [vmem:[#allocation4] sm:$0x1] %vm1814_vm7, %v1811_v51 }
 0xc47 PF: > { %p2189_p6 = scmp.eq.s32.totalorder %s2364_s21, 1  ;;  %s2274_s16 = smov [#allocation4]  }
 0xc48   : > { %s1823_s13 = sshll.u32 %s2274_s16, 4  ;;  %s1824_s13 = int_to_ptr.vmem [resolvable:$true] %s1823_s13 }
 0xc49   : > { %s2224_s28 = scalar_lea.vmem %s1824_s13, 16  ;;  %s2230_s29 = scalar_lea.vmem %s1824_s13, 32 }
 0xc4a   : > { %p2225_p7 = scmp.ne.s32.totalorder %s1824_s13, %s2224_s28  ;;  %p2231_p10 = scmp.lt.s32.totalorder %s1824_s13, %s1824_s13 }
 0xc4b   : > { %p2232_p11 = scmp.lt.s32.totalorder %s2230_s29, %s2224_s28 }
 0xc4c   : > { %p2226_p8 = pnand %p2225_p7, %p2189_p6 }
 0xc4d   : > { %p2233_p12 = por %p2232_p11, %p2231_p10 }
 0xc4e   : > { %p2227_p9 = pneg %p2226_p8 }
 0xc50   : > { %p2234_p13 = pnand %p2233_p12, %p2227_p9 }
 0xc52   : > { %2237 = shalt.err (!%p2234_p13)
}
 0xc53   : > { %s2612_s0 = sld [smem:[#allocation13_spill]] }
 0xc59   : > { %s2238_s24 = scalar_lea.hbm %s2612_s0, 16 }
 0xc5a   : > { %p2239_p0 = scmp.ne.s32.totalorder %s2612_s0, %s2238_s24  ;;  %p2244_p3 = scmp.lt.u32.totalorder %s2238_s24, %s2612_s0 }
 0xc5c   : > { %p2240_p1 = pnand %p2239_p0, %p2189_p6 }
 0xc5e   : > { %p2241_p2 = pneg %p2240_p1 }
 0xc60   : > { %p2246_p4 = pnand %p2244_p3, %p2241_p2 }
 0xc62   : > { %2249 = shalt.err (!%p2246_p4)
}
 0xc63   : > { %2186 = dma.vmem_to_hbm [thread:$0]  (%p2189_p6), %s1824_s13, 16, %s2612_s0, [#allocation5]  }
 0xc64   : > { %2255 = dma.done.wait (%p2189_p6), [#allocation5], 16  }
 0xc65   : > { %2257 = vsyncadd (%p2189_p6), [#allocation5], 4294967280 }
 0xc66 PF: > { %s2613_s17 = sld [smem:[#allocation7_spill]] }
 0xc6c   : > { %s28_s20 = sadd.s32 1, %s2613_s17  }
 0xc6d   : > { %p25_p5 = scmp.ge.s32.totalorder %s28_s20, 4  }
 0xc6f   :  { %27 = sbr.rel (!%p25_p5) target bundleno = 7 (0x7), region = 148 }
 0xc76   :  { %1836 = vsyncpa [#allocation5], 1 }
 0xc77   :  { %1838 = vsyncpa [#allocation5 + $0x1], 1 }

</bundles_post_ra>
